<compile_context>
chip_gen: v6e
topology: v6e:2x2x1
jax: 0.10.0
libtpu: 0.0.40
codegen_flags: <defaults>
</compile_context>

<pallas_src>
import functools
import math

import jax
import jax.numpy as jnp
from jax.experimental import pallas as pl
from jax.experimental.pallas import tpu as pltpu

_LANES = 128


def _round_up(x: int, m: int) -> int:
    return (x + m - 1) // m * m


def _vmem_capacity_bytes() -> int:
    """Per-core VMEM capacity; conservative 64 MiB fallback (v7x per-TC)."""
    try:
        info = pltpu.get_tpu_info()
        for attr in ("vmem_capacity_bytes", "vmem_size_bytes"):
            cap = getattr(info, attr, None)
            if cap:
                return int(cap)
    except Exception:
        pass
    return 64 << 20


def _router_kernel(x_ref, w_ref, b_ref, idx_ref, gate_ref, *, top_k: int,
                   num_experts: int, mm_dtype):
    # x arrives in its native dtype; cast to the matmul dtype in-register.
    x = x_ref[...].astype(mm_dtype)       # (tile_t, n_embed)
    w = w_ref[...]                        # (n_embed, ne_pad), mm_dtype
    b = b_ref[...]                        # (1, ne_pad), f32

    # Linear layer on the MXU; accumulate in f32 regardless of input dtype.
    logits = jnp.dot(x, w, preferred_element_type=jnp.float32) + b  # (Tt, NEp)
    tile_t, ne_pad = logits.shape
    out_lanes = idx_ref.shape[-1]         # 128 (or top_k rounded up to 128)

    col = jax.lax.broadcasted_iota(jnp.int32, (tile_t, ne_pad), 1)
    col_out = jax.lax.broadcasted_iota(jnp.int32, (tile_t, out_lanes), 1)

    # Monotone-sortable int32 key: signed integer order == float order.
    raw = pltpu.bitcast(logits, jnp.int32)
    key = jnp.where(raw < 0, raw ^ jnp.int32(0x7FFFFFFF), raw)

    idx_mask = jnp.int32(ne_pad - 1)      # ne_pad is a power of two
    hi_mask = jnp.int32(~(ne_pad - 1))
    neg_min = jnp.int32(-(2 ** 31))

    # Pack (truncated key | reversed column): one max reduce gives both the
    # value and the argmax; ties resolve to the smallest column index.
    packed = (key & hi_mask) | (idx_mask - col)
    packed = jnp.where(col < num_experts, packed, neg_min)  # mask lane padding

    idx_slab = jnp.zeros((tile_t, out_lanes), jnp.int32)
    val_slab = jnp.zeros((tile_t, out_lanes), jnp.float32)
    vmax = None
    for j in range(top_k):                # top_k small & static -> unrolled
        pmax = jnp.max(packed, axis=-1, keepdims=True)       # single XLU reduce
        sel = jnp.int32(ne_pad - 1) - (pmax & idx_mask)       # argmax column
        key_hi = pmax & hi_mask
        i_rec = jnp.where(key_hi < 0, key_hi ^ jnp.int32(0x7FFFFFFF), key_hi)
        val = pltpu.bitcast(i_rec, jnp.float32)               # selected logit
        if j == 0:
            vmax = val                                        # row max
        onehot = col_out == j                                 # hoisted, reused
        idx_slab = jnp.where(onehot, sel, idx_slab)
        val_slab = jnp.where(onehot, val, val_slab)
        if j + 1 < top_k:
            packed = jnp.where(packed == pmax, neg_min, packed)  # drop winner

    # One masked softmax over the lane-dense slab (exp once, on the EUP).
    lane_mask = col_out < top_k
    shifted = jnp.where(lane_mask, val_slab - vmax, 0.0)      # pad lanes safe
    e = jnp.where(lane_mask, jnp.exp(shifted), 0.0)
    inv = pl.reciprocal(jnp.sum(e, axis=-1, keepdims=True), approx=True)
    idx_ref[...] = idx_slab
    gate_ref[...] = (e * inv).astype(gate_ref.dtype)


def _const_spec(shape):
    """Single-buffered spec for grid-invariant operands (w, b)."""
    try:
        return pl.BlockSpec(shape, lambda i: (0, 0), pipeline_mode=pl.Buffered(1))
    except TypeError:   # older BlockSpec without pipeline_mode: default buffering
        return pl.BlockSpec(shape, lambda i: (0, 0))


def make_topk_router(w, b, top_k: int, *, matmul_dtype=jnp.bfloat16,
                     tile_tokens: int = 2048):
    """w: (n_embed, num_experts) = nn.Linear weight transposed; b: (num_experts,).

    Pads/casts router params ONCE (hoisted out of the hot path) and returns a
    jitted callable x (..., n_embed) -> (indices int32 (..., top_k),
    gates x.dtype (..., top_k)).
    """
    n_embed, num_experts = w.shape
    if not (1 <= top_k <= num_experts):
        raise ValueError("top_k must be in [1, num_experts]")

    mm_dtype = (jnp.dtype(matmul_dtype) if matmul_dtype is not None
                else jnp.dtype(w.dtype))
    mm_bytes = mm_dtype.itemsize
    # Pad experts to a power of two >= 128 (full vreg lane width).
    ne_pad = max(_LANES, 1 << (num_experts - 1).bit_length())
    # Lane-dense, 128-wide output slabs (not ne_pad-wide).
    out_lanes = _round_up(max(top_k, _LANES), _LANES)

    w_p = jnp.zeros((n_embed, ne_pad), mm_dtype).at[:, :num_experts].set(
        w.astype(mm_dtype))
    b_p = jnp.zeros((1, ne_pad), jnp.float32).at[:, :num_experts].set(
        b.astype(jnp.float32))

    kernel = functools.partial(_router_kernel, top_k=top_k,
                               num_experts=num_experts, mm_dtype=mm_dtype)

    def apply(x):
        *lead, ne = x.shape
        if ne != n_embed:
            raise ValueError("x last dim must equal n_embed")
        T = math.prod(lead) if lead else 1
        x2 = x.reshape(T, n_embed)              # native dtype: no cast, no pad

        x_bytes = x2.dtype.itemsize
        gate_dtype = x.dtype
        gate_bytes = jnp.dtype(gate_dtype).itemsize

        # Generation-aware tiling: fill VMEM (128 MiB v5e/v6e, 64 MiB/TC v7x)
        # minus ~25% headroom; w/b single-buffered, x & outputs double-buffered.
        vmem_cap = _vmem_capacity_bytes()
        budget = int(vmem_cap * 0.75)
        fixed = n_embed * ne_pad * mm_bytes + ne_pad * 4
        per_tok = (2 * n_embed * x_bytes
                   + 2 * out_lanes * (4 + gate_bytes)
                   + 10 * ne_pad * 4)           # f32/i32 top-k temporaries
        cap_tokens = max((budget - fixed) // per_tok, 8)
        # >= 2 grid steps so v7x's two TensorCores both get work.
        two_step_cap = _round_up(pl.cdiv(T, 2), 8)
        tile_t = min(tile_tokens, cap_tokens, two_step_cap)
        tile_t = max((tile_t // 8) * 8, 8)
        grid = (pl.cdiv(T, tile_t),)            # ragged last block handled by Pallas

        need = fixed + tile_t * per_tok
        vmem_limit = int(min(max(2 * need, 32 << 20), vmem_cap))

        cost = pl.CostEstimate(
            flops=2 * T * n_embed * ne_pad,
            transcendentals=T * out_lanes,
            bytes_accessed=(T * n_embed * x_bytes
                            + n_embed * ne_pad * mm_bytes + ne_pad * 4
                            + T * out_lanes * (4 + gate_bytes)),
        )

        idx_slab, gate_slab = pl.pallas_call(
            kernel,
            out_shape=(
                jax.ShapeDtypeStruct((T, out_lanes), jnp.int32),
                jax.ShapeDtypeStruct((T, out_lanes), gate_dtype),
            ),
            grid_spec=pltpu.PrefetchScalarGridSpec(
                num_scalar_prefetch=0,
                grid=grid,
                in_specs=[
                    # x stream; sweep pl.Buffered(3) here on v7x if a trace
                    # ever shows exposed DMA at tile boundaries.
                    pl.BlockSpec((tile_t, n_embed), lambda i: (i, 0)),
                    _const_spec((n_embed, ne_pad)),
                    _const_spec((1, ne_pad)),
                ],
                out_specs=[
                    pl.BlockSpec((tile_t, out_lanes), lambda i: (i, 0)),
                    pl.BlockSpec((tile_t, out_lanes), lambda i: (i, 0)),
                ],
            ),
            compiler_params=pltpu.CompilerParams(
                dimension_semantics=("parallel",),
                vmem_limit_bytes=vmem_limit,
            ),
            cost_estimate=cost,
        )(x2, w_p, b_p)

        indices = idx_slab[:, :top_k].reshape(*lead, top_k)
        gates = gate_slab[:, :top_k].reshape(*lead, top_k)
        return indices, gates

    return jax.jit(apply)


if __name__ == "__main__":
    batch, seq, n_embed, num_experts, top_k = 2, 8, 32, 8, 2

    key = jax.random.PRNGKey(0)
    kx, kw, kb = jax.random.split(key, 3)
    x = jax.random.normal(kx, (batch, seq, n_embed), dtype=jnp.float32)
    # nn.Linear params, weight stored transposed: (n_embed, num_experts).
    w = jax.random.normal(kw, (n_embed, num_experts), dtype=jnp.float32) * 0.1
    b = jax.random.normal(kb, (num_experts,), dtype=jnp.float32) * 0.1

    router = make_topk_router(w, b, top_k)
    indices, gates = router(x)
    jax.block_until_ready((indices, gates))

    # Pure-JAX reference using the same bf16 matmul / f32 accumulation.
    x_mm = x.astype(jnp.bfloat16).reshape(-1, n_embed)
    w_mm = w.astype(jnp.bfloat16)
    ref_logits = (jnp.dot(x_mm, w_mm, preferred_element_type=jnp.float32)
                  .reshape(batch, seq, num_experts) + b)
    ref_vals, ref_idx = jax.lax.top_k(ref_logits, top_k)
    ref_gates = jax.nn.softmax(ref_vals, axis=-1)

    assert jnp.array_equal(indices, ref_idx.astype(jnp.int32)), "indices mismatch"
    assert jnp.allclose(gates.astype(jnp.float32), ref_gates,
                        atol=2e-3, rtol=2e-3), "gates mismatch"

    print("KERNEL_OK")
</pallas_src>

<mosaic_0001>
module attributes {stable_mosaic.version = 11 : i64} {
  func.func @_router_kernel(%arg0: i32, %arg1: memref<8x32xf32, #tpu.memory_space<vmem>>, %arg2: memref<32x128xbf16, #tpu.memory_space<vmem>>, %arg3: memref<1x128xf32, #tpu.memory_space<vmem>>, %arg4: memref<8x128xi32, #tpu.memory_space<vmem>>, %arg5: memref<8x128xf32, #tpu.memory_space<vmem>>) attributes {dimension_semantics = [#tpu.dimension_semantics<parallel>], iteration_bounds = array<i64: 2>, scalar_prefetch = 0 : i64, scratch_operands = 0 : i64, tpu.core_type = #tpu.core_type<tc>, window_params = [{transform_indices = @transform_0, window_bounds = array<i64: 8, 32>}, {pipeline_mode = #tpu.pipeline_mode<synchronous>, transform_indices = @transform_1, window_bounds = array<i64: 32, 128>}, {pipeline_mode = #tpu.pipeline_mode<synchronous>, transform_indices = @transform_2, window_bounds = array<i64: 1, 128>}, {transform_indices = @transform_3, window_bounds = array<i64: 8, 128>}, {transform_indices = @transform_4, window_bounds = array<i64: 8, 128>}]} {
    %c0 = arith.constant 0 : index
    %c0_0 = arith.constant 0 : index
    %0 = vector.load %arg1[%c0, %c0_0] : memref<8x32xf32, #tpu.memory_space<vmem>>, vector<8x32xf32>
    %1 = arith.truncf %0 : vector<8x32xf32> to vector<8x32xbf16>
    %c0_1 = arith.constant 0 : index
    %c0_2 = arith.constant 0 : index
    %2 = vector.load %arg2[%c0_1, %c0_2] : memref<32x128xbf16, #tpu.memory_space<vmem>>, vector<32x128xbf16>
    %c0_3 = arith.constant 0 : index
    %c0_4 = arith.constant 0 : index
    %3 = vector.load %arg3[%c0_3, %c0_4] : memref<1x128xf32, #tpu.memory_space<vmem>>, vector<1x128xf32>
    %cst = arith.constant dense<0.000000e+00> : vector<8x128xf32>
    %4 = tpu.matmul %1, %2, %cst {dimension_numbers = #tpu.dot_dimension_numbers<[1], [0], [0], [1], [0, 0, 1, 1], [], []>} : vector<8x32xbf16>, vector<32x128xbf16>, vector<8x128xf32> -> vector<8x128xf32>
    %5 = vector.broadcast %3 : vector<1x128xf32> to vector<8x128xf32>
    %6 = arith.addf %4, %5 : vector<8x128xf32>
    %7 = tpu.iota {dimensions = array<i32: 1>} : vector<8x128xi32>
    %8 = tpu.iota {dimensions = array<i32: 1>} : vector<8x128xi32>
    %9 = tpu.bitcast %6 : vector<8x128xf32> -> vector<8x128xi32>
    %c0_i32 = arith.constant 0 : i32
    %10 = vector.broadcast %c0_i32 : i32 to vector<8x128xi32>
    %11 = arith.cmpi slt, %9, %10 : vector<8x128xi32>
    %c2147483647_i32 = arith.constant 2147483647 : i32
    %12 = vector.broadcast %c2147483647_i32 : i32 to vector<8x128xi32>
    %13 = arith.xori %9, %12 : vector<8x128xi32>
    %14 = arith.select %11, %13, %9 : vector<8x128xi1>, vector<8x128xi32>
    %c-128_i32 = arith.constant -128 : i32
    %15 = vector.broadcast %c-128_i32 : i32 to vector<8x128xi32>
    %16 = arith.andi %14, %15 : vector<8x128xi32>
    %c127_i32 = arith.constant 127 : i32
    %17 = vector.broadcast %c127_i32 : i32 to vector<8x128xi32>
    %18 = arith.subi %17, %7 : vector<8x128xi32>
    %19 = arith.ori %16, %18 : vector<8x128xi32>
    %c8_i32 = arith.constant 8 : i32
    %20 = vector.broadcast %c8_i32 : i32 to vector<8x128xi32>
    %21 = arith.cmpi slt, %7, %20 : vector<8x128xi32>
    %c-2147483648_i32 = arith.constant -2147483648 : i32
    %22 = vector.broadcast %c-2147483648_i32 : i32 to vector<8x128xi32>
    %23 = arith.select %21, %19, %22 : vector<8x128xi1>, vector<8x128xi32>
    %c0_i32_5 = arith.constant 0 : i32
    %24 = vector.broadcast %c0_i32_5 : i32 to vector<8x128xi32>
    %cst_6 = arith.constant 0.000000e+00 : f32
    %25 = vector.broadcast %cst_6 : f32 to vector<8x128xf32>
    %cst_7 = arith.constant dense<-2147483648> : vector<8xi32>
    %26 = vector.multi_reduction <maxsi>, %23, %cst_7 [1] : vector<8x128xi32> to vector<8xi32>
    %27 = vector.shape_cast %26 : vector<8xi32> to vector<8x1xi32>
    %c127_i32_8 = arith.constant 127 : i32
    %28 = vector.broadcast %c127_i32_8 : i32 to vector<8x1xi32>
    %29 = arith.andi %27, %28 : vector<8x1xi32>
    %c127_i32_9 = arith.constant 127 : i32
    %30 = vector.broadcast %c127_i32_9 : i32 to vector<8x1xi32>
    %31 = arith.subi %30, %29 : vector<8x1xi32>
    %c-128_i32_10 = arith.constant -128 : i32
    %32 = vector.broadcast %c-128_i32_10 : i32 to vector<8x1xi32>
    %33 = arith.andi %27, %32 : vector<8x1xi32>
    %c0_i32_11 = arith.constant 0 : i32
    %34 = vector.broadcast %c0_i32_11 : i32 to vector<8x1xi32>
    %35 = arith.cmpi slt, %33, %34 : vector<8x1xi32>
    %c2147483647_i32_12 = arith.constant 2147483647 : i32
    %36 = vector.broadcast %c2147483647_i32_12 : i32 to vector<8x1xi32>
    %37 = arith.xori %33, %36 : vector<8x1xi32>
    %38 = arith.select %35, %37, %33 : vector<8x1xi1>, vector<8x1xi32>
    %39 = tpu.bitcast %38 : vector<8x1xi32> -> vector<8x1xf32>
    %c0_i32_13 = arith.constant 0 : i32
    %40 = vector.broadcast %c0_i32_13 : i32 to vector<8x128xi32>
    %41 = arith.cmpi eq, %8, %40 : vector<8x128xi32>
    %42 = vector.shape_cast %31 : vector<8x1xi32> to vector<8x1xi32>
    %43 = vector.broadcast %42 : vector<8x1xi32> to vector<8x128xi32>
    %44 = arith.select %41, %43, %24 : vector<8x128xi1>, vector<8x128xi32>
    %45 = vector.shape_cast %39 : vector<8x1xf32> to vector<8x1xf32>
    %46 = vector.broadcast %45 : vector<8x1xf32> to vector<8x128xf32>
    %47 = arith.select %41, %46, %25 : vector<8x128xi1>, vector<8x128xf32>
    %48 = vector.broadcast %27 : vector<8x1xi32> to vector<8x128xi32>
    %49 = arith.cmpi eq, %23, %48 : vector<8x128xi32>
    %c-2147483648_i32_14 = arith.constant -2147483648 : i32
    %50 = vector.broadcast %c-2147483648_i32_14 : i32 to vector<8x128xi32>
    %51 = arith.select %49, %50, %23 : vector<8x128xi1>, vector<8x128xi32>
    %cst_15 = arith.constant dense<-2147483648> : vector<8xi32>
    %52 = vector.multi_reduction <maxsi>, %51, %cst_15 [1] : vector<8x128xi32> to vector<8xi32>
    %53 = vector.shape_cast %52 : vector<8xi32> to vector<8x1xi32>
    %c127_i32_16 = arith.constant 127 : i32
    %54 = vector.broadcast %c127_i32_16 : i32 to vector<8x1xi32>
    %55 = arith.andi %53, %54 : vector<8x1xi32>
    %c127_i32_17 = arith.constant 127 : i32
    %56 = vector.broadcast %c127_i32_17 : i32 to vector<8x1xi32>
    %57 = arith.subi %56, %55 : vector<8x1xi32>
    %c-128_i32_18 = arith.constant -128 : i32
    %58 = vector.broadcast %c-128_i32_18 : i32 to vector<8x1xi32>
    %59 = arith.andi %53, %58 : vector<8x1xi32>
    %c0_i32_19 = arith.constant 0 : i32
    %60 = vector.broadcast %c0_i32_19 : i32 to vector<8x1xi32>
    %61 = arith.cmpi slt, %59, %60 : vector<8x1xi32>
    %c2147483647_i32_20 = arith.constant 2147483647 : i32
    %62 = vector.broadcast %c2147483647_i32_20 : i32 to vector<8x1xi32>
    %63 = arith.xori %59, %62 : vector<8x1xi32>
    %64 = arith.select %61, %63, %59 : vector<8x1xi1>, vector<8x1xi32>
    %65 = tpu.bitcast %64 : vector<8x1xi32> -> vector<8x1xf32>
    %c1_i32 = arith.constant 1 : i32
    %66 = vector.broadcast %c1_i32 : i32 to vector<8x128xi32>
    %67 = arith.cmpi eq, %8, %66 : vector<8x128xi32>
    %68 = vector.shape_cast %57 : vector<8x1xi32> to vector<8x1xi32>
    %69 = vector.broadcast %68 : vector<8x1xi32> to vector<8x128xi32>
    %70 = arith.select %67, %69, %44 : vector<8x128xi1>, vector<8x128xi32>
    %71 = vector.shape_cast %65 : vector<8x1xf32> to vector<8x1xf32>
    %72 = vector.broadcast %71 : vector<8x1xf32> to vector<8x128xf32>
    %73 = arith.select %67, %72, %47 : vector<8x128xi1>, vector<8x128xf32>
    %c2_i32 = arith.constant 2 : i32
    %74 = vector.broadcast %c2_i32 : i32 to vector<8x128xi32>
    %75 = arith.cmpi slt, %8, %74 : vector<8x128xi32>
    %76 = vector.broadcast %39 : vector<8x1xf32> to vector<8x128xf32>
    %77 = arith.subf %73, %76 : vector<8x128xf32>
    %cst_21 = arith.constant 0.000000e+00 : f32
    %78 = vector.broadcast %cst_21 : f32 to vector<8x128xf32>
    %79 = arith.select %75, %77, %78 : vector<8x128xi1>, vector<8x128xf32>
    %80 = math.exp %79 : vector<8x128xf32>
    %cst_22 = arith.constant 0.000000e+00 : f32
    %81 = vector.broadcast %cst_22 : f32 to vector<8x128xf32>
    %82 = arith.select %75, %80, %81 : vector<8x128xi1>, vector<8x128xf32>
    %cst_23 = arith.constant dense<0.000000e+00> : vector<8xf32>
    %83 = vector.multi_reduction <add>, %82, %cst_23 [1] : vector<8x128xf32> to vector<8xf32>
    %84 = vector.shape_cast %83 : vector<8xf32> to vector<8x1xf32>
    %85 = tpu.reciprocal %84 {approx = true} : vector<8x1xf32> -> vector<8x1xf32>
    %c0_24 = arith.constant 0 : index
    %c0_25 = arith.constant 0 : index
    %86 = vector.load %arg4[%c0_24, %c0_25] : memref<8x128xi32, #tpu.memory_space<vmem>>, vector<8x128xi32>
    tpu.vector_store %arg4[%c0_24, %c0_25], %70 {strides = array<i32>} : memref<8x128xi32, #tpu.memory_space<vmem>>, vector<8x128xi32>,
    %87 = vector.broadcast %85 : vector<8x1xf32> to vector<8x128xf32>
    %88 = arith.mulf %82, %87 : vector<8x128xf32>
    %c0_26 = arith.constant 0 : index
    %c0_27 = arith.constant 0 : index
    %89 = vector.load %arg5[%c0_26, %c0_27] : memref<8x128xf32, #tpu.memory_space<vmem>>, vector<8x128xf32>
    tpu.vector_store %arg5[%c0_26, %c0_27], %88 {strides = array<i32>} : memref<8x128xf32, #tpu.memory_space<vmem>>, vector<8x128xf32>,
    return
  }
  func.func @transform_0(%arg0: i32) -> (i32, i32) {
    %c0_i32 = arith.constant 0 : i32
    %c0_i32_0 = arith.constant 0 : i32
    return %arg0, %c0_i32 : i32, i32
  }
  func.func @transform_1(%arg0: i32) -> (i32, i32) {
    %c0_i32 = arith.constant 0 : i32
    %c0_i32_0 = arith.constant 0 : i32
    %c0_i32_1 = arith.constant 0 : i32
    return %c0_i32, %c0_i32_0 : i32, i32
  }
  func.func @transform_2(%arg0: i32) -> (i32, i32) {
    %c0_i32 = arith.constant 0 : i32
    %c0_i32_0 = arith.constant 0 : i32
    %c0_i32_1 = arith.constant 0 : i32
    return %c0_i32, %c0_i32_0 : i32, i32
  }
  func.func @transform_3(%arg0: i32) -> (i32, i32) {
    %c0_i32 = arith.constant 0 : i32
    %c0_i32_0 = arith.constant 0 : i32
    return %arg0, %c0_i32 : i32, i32
  }
  func.func @transform_4(%arg0: i32) -> (i32, i32) {
    %c0_i32 = arith.constant 0 : i32
    %c0_i32_0 = arith.constant 0 : i32
    return %arg0, %c0_i32 : i32, i32
  }
}

</mosaic_0001>

<bundles_post_ra>
// kernel: apply.1
= control target key start
LH: loop header
LB: loop body
LE: loop exit
PB: predicated region body
PF: predicated region fallthrough
CT: control target
= control target key end

     0   :  { %10 = vsyncpa [#allocation3], 0  ;;  %s834_s0 = inlined_call_operand.hbm [shape: f32[16,32], index: 0, kind: input, shape index: {}]   ;;  %s835_s1 = inlined_call_operand.hbm [shape: bf16[32,128], index: 1, kind: input, shape index: {}]   ;;  %s836_s2 = inlined_call_operand.vmem [shape: f32[1,128], index: 2, kind: input, shape index: {}]   ;;  %s837_s3 = inlined_call_operand.vmem [shape: s32[16,128], index: 3, kind: output, shape index: {0}]   ;;  %s838_s4 = inlined_call_operand.vmem [shape: f32[16,128], index: 4, kind: output, shape index: {1}]  }
   0x1   :  { %12 = vsyncpa [#allocation3 + $0x1], 0 }
   0x2   :  { %13 = vsyncpa [#allocation5], 0  ;;  %s701_s15 = smov 0   ;;  %s703_s16 = smov 0  }
   0x3   :  { %s705_s17 = smov 0   ;;  %s707_s18 = smov 0  }
   0x4 LB: > { %s720_s19 = sadd.s32 4294967295, %s668_s18   ;;  %p39_p0 = scmp.ne.s32.totalorder %s660_s16, %s656_s15  ;;  %s668_s18 = sphi %s707_s18, %s853_s18   ;;  %s664_s17 = sphi %s705_s17, %s852_s17   ;;  %s660_s16 = sphi %s703_s16, %s851_s16   ;;  %s656_s15 = sphi %s701_s15, %s850_s15  }
   0x5   : > { %p839_p1 = scmp.eq.s32.totalorder %s720_s19, 0  ;;  %p489_p2 = scmp.ge.s32.totalorder %s668_s18, 1 }
   0x6   : > { %p144_p3 = scmp.lt.s32.totalorder %s668_s18, 3  ;;  %s670_s22 = smov [#allocation4]  }
   0x7   : > { %p728_p4 = por %p839_p1, %p39_p0  ;;  %s156_s23 = sshll.u32 %s670_s22, 4  ;;  %s157_s23 = int_to_ptr.vmem [resolvable:$true] %s156_s23 }
   0x8   : > { %p732_p5 = pnand %p489_p2, %p144_p3  ;;  %s745_s25 = sadd.s32 1, %s668_s18  }
   0x9   : > { %s842_s20 = scalar_select %p728_p4, 1, 0 }
   0xa   : > { %s843_s21 = scalar_select %p732_p5, 1, 0 }
   0xb   : > { %p522_p6 = pneg %p732_p5  ;;  %s26_s26 = sadd.s32 1, %s664_s17 }
   0xc   : > { %s23_s27 = ssub.s32 %s668_s18, %s745_s25  ;;  %s587_s28 = scalar_lea.vmem %s157_s23, 256 }
   0xd   : > { %p740_p7 = pnand %p522_p6, %p839_p1  ;;  %p588_p9 = scmp.ne.s32.totalorder %s157_s23, %s587_s28 }
   0xe   : > { %p595_p12 = scmp.lt.s32.totalorder %s157_s23, %s157_s23  ;;  %p596_p13 = scmp.lt.s32.totalorder %s587_s28, %s587_s28 }
   0xf   : > { %p578_p8 = pneg %p740_p7 }
  0x10   : > { %p597_p0 = por %p596_p13, %p595_p12 }
  0x11   : > { %p590_p10 = pnand %p588_p9, %p578_p8 }
  0x13   : > { %p591_p11 = pneg %p590_p10 }
  0x15   : > { %p598_p2 = pnand %p597_p0, %p591_p11 }
  0x17   : > { %601 = shalt.err (!%p598_p2)
}
  0x18   : > { %s671_s29 = smov 64   ;;  %s672_s30 = smov 4  }
  0x19   : > { %525 = dma.hbm_to_vmem [thread:$0]  (!%p740_p7), %s835_s1, 256, %s157_s23, [#allocation5], %s671_s29, %s671_s29, %s672_s30  }
  0x1a   : > { %p24_p3 = scmp.eq.s32.totalorder %s23_s27, 0  ;;  %p33_p6 = scmp.ne.s32.totalorder %s664_s17, %s660_s16 }
  0x1b   : > { %p34_p8 = scmp.eq.s32.totalorder %s668_s18, 0  ;;  %p531_p9 = scmp.lt.s32.totalorder %s668_s18, 2 }
  0x1c   : > { %s762_s7 = scalar_select %p24_p3, %s664_s17, %s26_s26  }
  0x1d   : > { %p35_p10 = por %p34_p8, %p33_p6  ;;  %s173_s8 = sand.u32 1, %s664_s17  }
  0x1e   : > { %s492_s9 = sshll.u32 %s173_s8, 3  ;;  %s493_s10 = sshll.u32 %s668_s18, 7 }
  0x1f   : > { %s769_s13 = scalar_lea.hbm %s834_s0, %s493_s10  ;;  %s177_s14 = scalar_lea.vmem [#allocation2], %s492_s9 }
  0x20   : > { %s184_s15 = sshll.u32 %s177_s14, 4  ;;  %p771_p7 = pnand %p531_p9, %p35_p10  ;;  %s185_s15 = int_to_ptr.vmem [resolvable:$true] %s184_s15 }
  0x21   : > { %s174_s23 = scalar_lea.sflag [#allocation3], %s173_s8  ;;  %s602_s24 = scalar_lea.hbm %s769_s13, 128 }
  0x22   : > { %p603_p11 = scmp.ne.s32.totalorder %s769_s13, %s602_s24  ;;  %p604_p12 = pneg %p771_p7 }
  0x23   : > { %s607_s27 = scalar_lea.hbm %s834_s0, 256  ;;  %p608_p2 = scmp.lt.s32.totalorder %s769_s13, %s834_s0 }
  0x24   : > { %p605_p13 = pnand %p604_p12, %p603_p11  ;;  %p609_p3 = scmp.lt.s32.totalorder %s607_s27, %s602_s24 }
  0x26   : > { %p606_p0 = pneg %p605_p13  ;;  %p610_p6 = por %p609_p3, %p608_p2 }
  0x28   : > { %p611_p8 = pnand %p610_p6, %p606_p0 }
  0x2a   : > { %614 = shalt.err (!%p611_p8)
}
  0x2b   : > { %s615_s30 = scalar_lea.vmem %s185_s15, 128  ;;  %s673_s5 = smov [#allocation2]  }
  0x2c   : > { %p616_p9 = scmp.ne.s32.totalorder %s185_s15, %s615_s30  ;;  %s620_s6 = sshll.u32 %s673_s5, 4  ;;  %s621_s6 = int_to_ptr.vmem [resolvable:$false] %s620_s6 }
  0x2d   : > { %s622_s8 = scalar_lea.vmem %s621_s6, 256  ;;  %p623_p11 = scmp.lt.s32.totalorder %s185_s15, %s621_s6 }
  0x2e   : > { %p618_p10 = pnand %p616_p9, %p604_p12  ;;  %p624_p13 = scmp.lt.s32.totalorder %s622_s8, %s615_s30 }
  0x30   : > { %p619_p1 = pneg %p618_p10  ;;  %p625_p4 = por %p624_p13, %p623_p11 }
  0x32   : > { %p626_p5 = pnand %p625_p4, %p619_p1 }
  0x34   : > { %629 = shalt.err (!%p626_p5)
}
  0x35   : > { %529 = dma.hbm_to_vmem [thread:$0]  (!%p771_p7), %s769_s13, 128, %s185_s15, %s174_s23  }
  0x36   : > { %p846_p0 = scmp.ne.s32.totalorder %s843_s21, 0 }
  0x37   : > { %s195_s9 = sand.u32 (!%p846_p0), 1, %s660_s16   ;;  %p847_p12 = scmp.ne.s32.totalorder (!%p846_p0), %s842_s20, 0 }
  0x38   : > { %193 = sbr.rel (%p846_p0) target bundleno = 1032 (0x408), region = 32  ;;  %s495_s10 = sshll.u32 (!%p846_p0), %s195_s9, 3 }
  0x39   : > { %s196_s11 = scalar_lea.sflag (!%p846_p0), [#allocation3], %s195_s9  ;;  %s199_s12 = scalar_lea.vmem (!%p846_p0), [#allocation2], %s495_s10 }
  0x3d   : > { %647 = dma.done.wait (%p847_p12), %s196_s11, 128  }
  0x3e   : > { %649 = vsyncadd (%p847_p12), %s196_s11, 4294967168  ;;  %p848_p1 = scmp.eq.s32.totalorder %s720_s19, 0 }
  0x40   : > { %651 = dma.done.wait (%p848_p1), [#allocation5], 256   ;;  %p849_p4 = pmov %p848_p1 }
  0x41   : > { %v674_v0 = vmov 0.0   ;;  %vm675_vm0 = vmmov 0   ;;  %v570_v1 = vld [vmem:[#allocation4 + $0x8] sm:$0xff]   ;;  %v571_v2 = vld [vmem:[#allocation4] sm:$0xff]   ;;  %v240_v3 = vld [vmem:[%s199_s12] sm:$0xff]  ;;  %vm265_vm1 = vcmask 261120   ;;  %v309_v5 = vlaneseq }
  0x42   : > { %653 = vsyncadd (%p849_p4), [#allocation5], 4294967040  ;;  %508 = vmatprep.subr.bf16.mxu0 %v674_v0  ;;  %512 = vmatprep.mubr.msk.bf16.mxu0 %vm675_vm0, %v674_v0  ;;  %v241_v4 = vpack.c.bf16 %v240_v3, %v240_v3  ;;  %v499_v6 = vld [vmem:[%s836_s2] ss:$0 sm:$0xff]  ;;  %p231_p5 = scmp.lt.s32.totalorder %s720_s19, 1 }
  0x43   : > { %509 = vmatpush3.bf16.msra.mxu0 %v570_v1  ;;  %v803_v8 = vand.u32 127, %v309_v5 }
  0x44   : > { %510 = vmatprep.subr.bf16.mxu0 %v674_v0  ;;  %s855_s19 = smov (!%p231_p5, %s720_s19), 1 }
  0x45   : > { %v316_v12 = vsub.s32 127, %v803_v8  ;;  %vm318_vm3 = vcmp.lt.s32.totalorder %v803_v8, 8  ;;  %s497_s13 = sshll.u32 %s855_s19, 3  ;;  %vm341_vm8 = vcmp.eq.s32.totalorder %v803_v8, 0  ;;  %vm367_vm9 = vcmp.eq.s32.totalorder %v803_v8, 1 }
  0x46   : > { %s234_s22 = scalar_lea.vmem %s837_s3, %s497_s13  ;;  %vm370_vm11 = vcmp.lt.s32.totalorder %v803_v8, 2  ;;  %s238_s24 = scalar_lea.vmem %s838_s4, %s497_s13 }
  0x47   : > { %511 = vmatpush3.bf16.msra.mxu0 %v571_v2 }
  0x4a   : > { %513 = vmatmul.mubr.msk.bf16.vlgmr.msra.gmra.mxu0 %vm265_vm1, %v241_v4 }
 0x10a   : > { %v303_v7 = vpop.f32.mrf.mxu0 }
 0x10b   : > { %v304_v9 = vadd.f32 %v499_v6, %v303_v7 }
 0x10c   : > { %v514_v10 = vpop.f32.mrf.mxu0 }
 0x10d   : > { %vm312_vm2 = vcmp.lt.s32.totalorder %v304_v9, 0  ;;  %v313_v11 = vxor.u32 2147483647, %v304_v9 }
 0x10e   : > { %v306_v13 = vpop.f32.mrf.mxu0 }
 0x10f   : > { %v314_v14 = vsel %vm312_vm2, %v313_v11, %v304_v9 }
 0x110   : > { %v315_v15 = vand.u32 4294967168, %v314_v14  ;;  %v515_v16 = vpop.f32.mrf.mxu0 }
 0x112   : > { %v317_v17 = vor.u32 %v316_v12, %v315_v15 }
 0x114   : > { %v319_v18 = vsel %vm318_vm3, %v317_v17, 2147483648 }
 0x115   : > { %v321_v19 = vshra.s32 %v319_v18, 16  ;;  %v320_v21 = vand.u32 65535, %v319_v18 }
 0x117   : > { %v323_v20 = vcvt.s32.f32 %v321_v19  ;;  %v322_v23 = vcvt.s32.f32 %v320_v21 }
 0x119   : > { %324 = vmax.xlane.f32.xlu0 %v323_v20 }
 0x1a2   : > { %v325_v22 = vpop.xlane.xlu0 %324 }
 0x1a3   : > { %vm326_vm4 = vcmp.eq.f32.partialorder %v323_v20, %v325_v22  ;;  %v331_v25 = vcvt.f32.s32 %v325_v22 }
 0x1a4   : > { %v327_v24 = vsel %vm326_vm4, %v322_v23, -inf }
 0x1a5   : > { %328 = vmax.xlane.f32.xlu0 %v327_v24  ;;  %v332_v27 = vshll.u32 %v331_v25, 16 }
 0x22e   : > { %v329_v26 = vpop.xlane.xlu0 %328 }
 0x22f   : > { %v330_v28 = vcvt.f32.s32 %v329_v26 }
 0x231   : > { %v333_v29 = vadd.s32 %v332_v27, %v330_v28 }
 0x233   : > { %vm344_vm5 = vcmp.eq.s32.totalorder %v319_v18, %v333_v29  ;;  %v336_v38 = vand.u32 4294967168, %v333_v29  ;;  %v334_v39 = vand.u32 127, %v333_v29 }
 0x234   : > { %v345_v30 = vsel %vm344_vm5, 2147483648, %v319_v18 }
 0x235   : > { %v347_v31 = vshra.s32 %v345_v30, 16  ;;  %v346_v33 = vand.u32 65535, %v345_v30  ;;  %v338_v43 = vxor.u32 2147483647, %v336_v38  ;;  %vm337_vm7 = vcmp.lt.s32.totalorder %v336_v38, 0 }
 0x236   : > { %v335_v45 = vsub.s32 127, %v334_v39 }
 0x237   : > { %v349_v32 = vcvt.s32.f32 %v347_v31  ;;  %v348_v35 = vcvt.s32.f32 %v346_v33  ;;  %v339_v48 = vsel %vm337_vm7, %v338_v43, %v336_v38 }
 0x238   : > { %v342_v51 = vsel %vm341_vm8, %v335_v45, 0  ;;  %v343_v52 = vsel %vm341_vm8, %v339_v48, 0.0 }
 0x239   : > { %350 = vmax.xlane.f32.xlu1 %v349_v32 }
 0x2c2   : > { %v351_v34 = vpop.xlane.xlu1 %350 }
 0x2c3   : > { %vm352_vm6 = vcmp.eq.f32.partialorder %v349_v32, %v351_v34  ;;  %v357_v37 = vcvt.f32.s32 %v351_v34 }
 0x2c4   : > { %v353_v36 = vsel %vm352_vm6, %v348_v35, -inf }
 0x2c5   : > { %354 = vmax.xlane.f32.xlu1 %v353_v36  ;;  %v358_v41 = vshll.u32 %v357_v37, 16 }
 0x34e   : > { %v355_v40 = vpop.xlane.xlu1 %354 }
 0x34f   : > { %v356_v42 = vcvt.f32.s32 %v355_v40 }
 0x351   : > { %v359_v44 = vadd.s32 %v358_v41, %v356_v42 }
 0x353   : > { %v360_v46 = vand.u32 127, %v359_v44  ;;  %v362_v47 = vand.u32 4294967168, %v359_v44 }
 0x355   : > { %v361_v49 = vsub.s32 127, %v360_v46  ;;  %vm363_vm10 = vcmp.lt.s32.totalorder %v362_v47, 0  ;;  %v364_v50 = vxor.u32 2147483647, %v362_v47 }
 0x357   : > { %v365_v53 = vsel %vm363_vm10, %v364_v50, %v362_v47  ;;  %v368_v54 = vsel %vm367_vm9, %v361_v49, %v342_v51 }
 0x358   : > { %v369_v55 = vsel %vm367_vm9, %v365_v53, %v343_v52  ;;  %379 = vst [vmem:[%s234_s22] sm:$0xff] %v368_v54 }
 0x359   : > { %v371_v56 = vsub.f32 %v369_v55, %v339_v48 }
 0x35b   : > { %v372_v57 = vsel %vm370_vm11, %v371_v56, 0.0 }
 0x35c   : > { %v373_v58 = vmul.f32 1.442695, %v372_v57 }
 0x35e   : > { %572 = vpow2.f32 %v373_v58 }
 0x36b   : > { %v573_v59 = vpop.eup %572 }
 0x36c   : > { %v375_v60 = vsel %vm370_vm11, %v573_v59, 0.0 }
 0x36d   : > { %376 = vadd.xlane.f32.xlu0 %v375_v60 }
 0x3f6   : > { %v377_v61 = vpop.xlane.xlu0 %376 }
 0x3f7   : > { %574 = vrcp.f32 %v377_v61 }
 0x404   : > { %v575_v62 = vpop.eup %574 }
 0x405   : > { %v380_v63 = vmul.f32 %v575_v62, %v375_v60 }
 0x407   : > { %381 = vst [vmem:[%s238_s24] sm:$0xff] %v380_v63 }
 0x408 PF: > { %p16_p7 = scmp.ge.s32.totalorder %s745_s25, 4   ;;  %s850_s15 = smov %s660_s16 }
 0x409   : > { %s851_s16 = smov %s664_s17  ;;  %s852_s17 = smov %s762_s7 }
 0x40a   : > { %s853_s18 = smov %s745_s25  ;;  %18 = sbr.rel (!%p16_p7) target bundleno = 4 (0x4), region = 88 }
 0x40f   :  { %415 = vsyncpa [#allocation3], 1 }
 0x410   :  { %417 = vsyncpa [#allocation3 + $0x1], 1 }
 0x411   :  { %418 = vsyncpa [#allocation5], 1 }

</bundles_post_ra>
